<compile_context>
chip_gen: v7x
topology: tpu7x:2x2x1
jax: 0.10.0
libtpu: 0.0.40
codegen_flags: <defaults>
</compile_context>

<pallas_src>
import functools

import jax
import jax.numpy as jnp
from jax import lax
from jax.experimental import pallas as pl
from jax.experimental.pallas import tpu as pltpu


_SQRT_HALF = 0.7071067811865476       # 1/sqrt(2)
_SQRT_2_OVER_PI = 0.7978845608028654  # sqrt(2/pi)


def _gelu(h, approximate):
    if approximate:
        # tanh-approx GELU: one EUP op per element (separate VLIW slot, effectively
        # free under MXU slack). Recommended on v5e / compute-bound runs.
        return 0.5 * h * (1.0 + jnp.tanh(_SQRT_2_OVER_PI * (h + 0.044715 * h * h * h)))
    # exact GELU (matches nn.GELU default): 0.5*x*(1+erf(x/sqrt(2))).
    # erf lowers to a multi-op f32 VPU polynomial (competes for the VALU slot).
    return 0.5 * h * (1.0 + lax.erf(h * _SQRT_HALF))


def _round_up(x, m):
    return (x + m - 1) // m * m


# --------------------------------------------------------------------------- #
# Kernels
# --------------------------------------------------------------------------- #

def _ffn_kernel_resident(x_ref, w1_ref, b1_ref, w2_ref, b2_ref, o_ref, *, approximate):
    """Single-pass FFN: full W1/W2 resident in VMEM, grid = (token tiles,).

    No f32 accumulator scratch and no read-modify-write: the whole d_ff reduction
    happens in one MXU pass per token tile.
    """
    h = jnp.dot(x_ref[...], w1_ref[...], preferred_element_type=jnp.float32) + b1_ref[...]
    g = _gelu(h, approximate)
    y = jnp.dot(g.astype(w2_ref.dtype), w2_ref[...], preferred_element_type=jnp.float32)
    o_ref[...] = (y + b2_ref[...]).astype(o_ref.dtype)


def _ffn_kernel_tiled(x_ref, w1_ref, b1_ref, w2_ref, b2_ref, o_ref, acc_ref, *, approximate):
    """d_ff-reduction FFN: grid = (token tiles, d_ff tiles); d_ff axis is reduction."""
    k = pl.program_id(1)

    @pl.when(k == 0)
    def _():
        acc_ref[...] = jnp.zeros_like(acc_ref)

    # b1 is resident as (num_k_tiles, tf); pick this step's row (dynamic sublane index).
    b1 = b1_ref[pl.ds(k, 1), :]

    # linear1 on the MXU: bf16 operands, f32 accumulation; bias added in f32.
    h = jnp.dot(x_ref[...], w1_ref[...], preferred_element_type=jnp.float32) + b1
    g = _gelu(h, approximate)
    # Cast activation back to the MXU operand dtype (bf16) before linear2.
    acc_ref[...] += jnp.dot(g.astype(w2_ref.dtype), w2_ref[...],
                            preferred_element_type=jnp.float32)

    @pl.when(k == pl.num_programs(1) - 1)
    def _():
        o_ref[...] = (acc_ref[...] + b2_ref[...]).astype(o_ref.dtype)


# --------------------------------------------------------------------------- #
# Generation-aware configuration
# --------------------------------------------------------------------------- #

@functools.lru_cache(maxsize=None)
def _chip_config():
    """Per-generation tiling defaults.

    tm ~= peak_FLOPs / HBM_BW so that in the streaming (tf < d_ff) path the
    per-token-tile weight re-stream stays below the MXU time; resident-weight
    threshold / vmem limit track physical VMEM (128 MiB v5e/v6e, 64 MiB/TC v7x).
    """
    kind = ""
    try:
        kind = jax.devices()[0].device_kind.lower()
    except Exception:
        pass
    if "v7" in kind:                                  # v7x: 64 MiB VMEM per TC, 3.2 TB/s
        cfg = dict(tm=512, tf_pref=512,
                   resident_weight_bytes=36 << 20, vmem_limit=50 << 20)
    elif "v6" in kind:                                # v6e: 128 MiB VMEM, 1.4 TB/s
        cfg = dict(tm=1024, tf_pref=1024,
                   resident_weight_bytes=80 << 20, vmem_limit=100 << 20)
    elif "v5" in kind:                                # v5e: 128 MiB VMEM, 0.82 TB/s
        cfg = dict(tm=256, tf_pref=1024,
                   resident_weight_bytes=64 << 20, vmem_limit=100 << 20)
    else:                                             # unknown: conservative (small VMEM)
        cfg = dict(tm=512, tf_pref=512,
                   resident_weight_bytes=36 << 20, vmem_limit=48 << 20)
    try:  # refine against the actual per-core VMEM capacity when queryable
        cap = pltpu.get_tpu_info().vmem_capacity_bytes
        cfg["vmem_limit"] = min(cfg["vmem_limit"], int(cap * 0.8))
    except Exception:
        pass
    return cfg


@functools.lru_cache(maxsize=None)
def _buffered_one_supported():
    """Probe (once, eagerly) whether pl.Buffered(1) single-buffering lowers on this
    jax/libtpu combo, so jit-traced callers never rely on exception-driven fallback."""
    def _probe(x_ref, o_ref):
        o_ref[...] = x_ref[...]
    try:
        x = jnp.zeros((8, 128), jnp.float32)
        out = pl.pallas_call(
            _probe,
            out_shape=jax.ShapeDtypeStruct((8, 128), jnp.float32),
            grid=(2,),
            in_specs=[pl.BlockSpec((8, 128), lambda i: (0, 0),
                                   pipeline_mode=pl.Buffered(1))],
            out_specs=pl.BlockSpec((8, 128), lambda i: (0, 0)),
        )(x)
        jax.block_until_ready(out)
        return True
    except Exception:  # any lowering/runtime failure -> treat as unsupported
        return False


# --------------------------------------------------------------------------- #
# Wrapper
# --------------------------------------------------------------------------- #

def position_wise_ffn(x, w1, b1, w2, b2, *, tm=None, tf=None,
                      compute_dtype=jnp.bfloat16, approximate_gelu=False,
                      vmem_limit_bytes=None):
    """GPT-1 position-wise FFN: linear(d->4d) -> GELU -> linear(4d->d).

    x:  [N, d_model] tokens-major activations (N = batch*seq)
    w1: [d_model, d_ff], b1: [d_ff]   (d_ff = 4*d_model)
    w2: [d_ff, d_model], b2: [d_model]

    tm: token-row tile; None = per-generation default (v5e 256 / v6e 1024 / v7x 512),
        clamped to N and rounded to 16 (bf16 sublanes) / 128 (MXU rows).
    tf: d_ff tile; None = auto. Weights are kept fully resident in VMEM (DMA'd from
        HBM once) when they fit this generation's budget; otherwise d_ff is tiled and
        the reduction runs over grid axis 1 with an f32 VMEM accumulator.
    approximate_gelu: False matches nn.GELU() (exact erf). True uses the tanh
        approximation, which moves the transcendental to the EUP slot (recommended
        on v5e or whenever the kernel is VPU-bound); output differs by <~3e-3.
    """
    n, d_model = x.shape
    d_ff = w1.shape[1]
    out_dtype = x.dtype
    out_isz = jnp.dtype(out_dtype).itemsize
    c_isz = jnp.dtype(compute_dtype).itemsize

    cfg = _chip_config()
    if vmem_limit_bytes is None:
        vmem_limit_bytes = cfg["vmem_limit"]
    budget = int(vmem_limit_bytes * 0.85)  # headroom for Mosaic internal scratch

    single_buf = _buffered_one_supported()
    weight_copies = 1 if single_buf else 2  # Buffered(1) halves resident-weight VMEM

    # ---- token-row tile ----
    if tm is None:
        tm = cfg["tm"]
    tm = max(16, min(tm, n))
    tm = _round_up(tm, 16)          # bf16 sublane packing
    if tm > 128:
        tm = _round_up(tm, 128)     # full MXU-row cadence

    weight_bytes = 2 * d_model * d_ff * c_isz  # W1 + W2 in compute dtype

    def _pick_tf_stream():
        for cand in (cfg["tf_pref"], 1024, 512, 256, 128):
            if cand < d_ff and d_ff % cand == 0:
                return cand
        return d_ff

    # ---- d_ff tiling: resident weights when they fit this generation's VMEM ----
    tf_user = tf
    if tf is None:
        tf = d_ff if weight_bytes * weight_copies <= cfg["resident_weight_bytes"] \
            else _pick_tf_stream()
    else:
        assert d_ff % tf == 0 and (tf == d_ff or tf % 128 == 0), \
            "tf must tile d_ff in lane (128) multiples"
    resident = (tf == d_ff)

    # ---- VMEM footprint guard: shrink tm / tf (or switch path) instead of OOM ----
    def _resident_fits(tm_):
        wts = weight_bytes * weight_copies
        act = 2 * tm_ * d_model * c_isz + 2 * tm_ * d_model * out_isz   # x + out (2 bufs)
        hid = tm_ * d_ff * (4 + c_isz)                                  # h (f32) + g
        bias = (d_ff + d_model) * 4
        return wts + act + hid + bias <= budget

    def _tiled_fits(tm_, tf_):
        wblk = 2 * 2 * d_model * tf_ * c_isz                            # W1 + W2 blocks, 2 bufs
        act = 2 * tm_ * d_model * c_isz + 2 * tm_ * d_model * out_isz
        acc = tm_ * d_model * 4
        hid = tm_ * tf_ * (4 + c_isz)
        bias = (d_ff + d_model) * 4
        return wblk + act + acc + hid + bias <= budget

    if resident:
        while tm > 128 and not _resident_fits(tm):
            tm = _round_up(tm // 2, 128)
        if not _resident_fits(tm) and tf_user is None:
            # Weights are under the residency threshold but the (tm, d_ff) hidden
            # activation doesn't fit: stream/reduce over d_ff instead.
            tf = _pick_tf_stream()
            resident = (tf == d_ff)
    if not resident:
        while tf > 256 and not _tiled_fits(tm, tf) and d_ff % (tf // 2) == 0:
            tf //= 2
        while tm > 128 and not _tiled_fits(tm, tf):
            tm = _round_up(tm // 2, 128)

    # ---- row padding: N not divisible by tm handled by padding, not assertion ----
    n_pad = _round_up(n, tm)
    if n_pad != n:
        x = jnp.pad(x, ((0, n_pad - n), (0, 0)))

    # bf16 MXU operands (f32 accumulation inside the kernel); biases stay f32.
    x_c = x.astype(compute_dtype)
    w1_c = w1.astype(compute_dtype)
    w2_c = w2.astype(compute_dtype)
    b2_2d = b2.astype(jnp.float32).reshape(1, d_model)
    if resident:
        b1_2d = b1.astype(jnp.float32).reshape(1, d_ff)
    else:
        b1_2d = b1.astype(jnp.float32).reshape(d_ff // tf, tf)  # resident, row-per-k-step

    # ---- advisory cost estimate (weights are re-streamed per row tile when tiled) ----
    n_row_tiles = n_pad // tm
    weight_reads = 1 if resident else n_row_tiles
    cost = pl.CostEstimate(
        flops=2 * 2 * n_pad * d_model * d_ff,                     # two matmuls
        transcendentals=(n_pad * d_ff) if approximate_gelu else 0,  # erf = VPU polynomial
        bytes_accessed=(n_pad * d_model * c_isz
                        + weight_reads * weight_bytes
                        + (d_ff + d_model) * 4
                        + n_pad * d_model * out_isz),
    )

    def _const_spec(shape, index_map):
        # Constant-index blocks are fetched once; single-buffer them when supported.
        if single_buf:
            return pl.BlockSpec(shape, index_map, pipeline_mode=pl.Buffered(1))
        return pl.BlockSpec(shape, index_map)

    if resident:
        grid = (n_row_tiles,)
        in_specs = [
            pl.BlockSpec((tm, d_model), lambda i: (i, 0)),        # x tile
            _const_spec((d_model, d_ff), lambda i: (0, 0)),       # W1 (resident)
            _const_spec((1, d_ff), lambda i: (0, 0)),             # b1 (resident)
            _const_spec((d_ff, d_model), lambda i: (0, 0)),       # W2 (resident)
            _const_spec((1, d_model), lambda i: (0, 0)),          # b2 (resident)
        ]
        out = pl.pallas_call(
            functools.partial(_ffn_kernel_resident, approximate=approximate_gelu),
            out_shape=jax.ShapeDtypeStruct((n_pad, d_model), out_dtype),
            grid_spec=pltpu.PrefetchScalarGridSpec(
                num_scalar_prefetch=0,
                grid=grid,
                in_specs=in_specs,
                out_specs=pl.BlockSpec((tm, d_model), lambda i: (i, 0)),
                scratch_shapes=[],
            ),
            compiler_params=pltpu.CompilerParams(
                dimension_semantics=("parallel",),
                vmem_limit_bytes=vmem_limit_bytes,
            ),
            cost_estimate=cost,
        )(x_c, w1_c, b1_2d, w2_c, b2_2d)
    else:
        n_k = d_ff // tf
        grid = (n_row_tiles, n_k)
        in_specs = [
            pl.BlockSpec((tm, d_model), lambda i, k: (i, 0)),     # x tile
            pl.BlockSpec((d_model, tf), lambda i, k: (0, k)),     # W1 slab
            _const_spec((n_k, tf), lambda i, k: (0, 0)),          # b1 (resident, sliced in-kernel)
            pl.BlockSpec((tf, d_model), lambda i, k: (k, 0)),     # W2 slab
            _const_spec((1, d_model), lambda i, k: (0, 0)),       # b2 (resident)
        ]
        out = pl.pallas_call(
            functools.partial(_ffn_kernel_tiled, approximate=approximate_gelu),
            out_shape=jax.ShapeDtypeStruct((n_pad, d_model), out_dtype),
            grid_spec=pltpu.PrefetchScalarGridSpec(
                num_scalar_prefetch=0,
                grid=grid,
                in_specs=in_specs,
                out_specs=pl.BlockSpec((tm, d_model), lambda i, k: (i, 0)),
                scratch_shapes=[pltpu.VMEM((tm, d_model), jnp.float32)],
            ),
            compiler_params=pltpu.CompilerParams(
                dimension_semantics=("parallel", "arbitrary"),
                vmem_limit_bytes=vmem_limit_bytes,
            ),
            cost_estimate=cost,
        )(x_c, w1_c, b1_2d, w2_c, b2_2d)

    return out[:n] if n_pad != n else out


# --------------------------------------------------------------------------- #
# Reference + demo
# --------------------------------------------------------------------------- #

def _init_linear(key, fan_in, fan_out, dtype=jnp.float32):
    """Deterministic PyTorch-style uniform init: U(-1/sqrt(fan_in), 1/sqrt(fan_in))."""
    kw, kb = jax.random.split(key)
    bound = 1.0 / jnp.sqrt(fan_in)
    w = jax.random.uniform(kw, (fan_in, fan_out), dtype, -bound, bound)
    b = jax.random.uniform(kb, (fan_out,), dtype, -bound, bound)
    return w, b


def _ffn_reference(x, w1, b1, w2, b2):
    h = x @ w1 + b1
    g = 0.5 * h * (1.0 + lax.erf(h * _SQRT_HALF))
    return g @ w2 + b2


if __name__ == "__main__":
    key = jax.random.PRNGKey(0)
    kx, k1, k2, kx2, k3, k4 = jax.random.split(key, 6)

    # ---- check 1: small GPT-1-style shapes (resident-weight, no-accumulator path) ----
    batch, seq, d_model = 2, 8, 32
    d_ff = 4 * d_model
    x = jax.random.normal(kx, (batch, seq, d_model), jnp.float32)
    w1, b1 = _init_linear(k1, d_model, d_ff)
    w2, b2 = _init_linear(k2, d_ff, d_model)

    x_flat = x.reshape(batch * seq, d_model)
    out = position_wise_ffn(x_flat, w1, b1, w2, b2).reshape(batch, seq, d_model)
    jax.block_until_ready(out)

    ref = _ffn_reference(x_flat, w1, b1, w2, b2).reshape(batch, seq, d_model)
    # bf16 MXU operands with f32 accumulation -> ~1e-2 relative error vs pure-f32 ref.
    assert jnp.allclose(out, ref, atol=3e-2, rtol=3e-2), "mismatch (resident path)"

    # ---- check 2: exercise the d_ff-reduction path + row padding ----
    d_model2 = 128
    d_ff2 = 4 * d_model2
    n2 = 100  # not a multiple of 8/16 -> exercises pad/slice + tm rounding path
    x2 = jax.random.normal(kx2, (n2, d_model2), jnp.float32)
    w1b, b1b = _init_linear(k3, d_model2, d_ff2)
    w2b, b2b = _init_linear(k4, d_ff2, d_model2)

    out2 = position_wise_ffn(x2, w1b, b1b, w2b, b2b, tf=256)  # 2 reduction steps over d_ff
    jax.block_until_ready(out2)
    ref2 = _ffn_reference(x2, w1b, b1b, w2b, b2b)
    assert out2.shape == (n2, d_model2)
    assert jnp.allclose(out2, ref2, atol=3e-2, rtol=3e-2), "mismatch (d_ff-tiled path)"

    print("KERNEL_OK")
</pallas_src>

<mosaic_0001>
module attributes {stable_mosaic.version = 11 : i64} {
  func.func @_probe(%arg0: i32, %arg1: memref<8x128xf32, #tpu.memory_space<vmem>>, %arg2: memref<8x128xf32, #tpu.memory_space<vmem>>) attributes {dimension_semantics = [#tpu.dimension_semantics<arbitrary>], iteration_bounds = array<i64: 2>, scalar_prefetch = 0 : i64, scratch_operands = 0 : i64, tpu.core_type = #tpu.core_type<tc>, window_params = [{pipeline_mode = #tpu.pipeline_mode<synchronous>, transform_indices = @transform_0, window_bounds = array<i64: 8, 128>}, {pipeline_mode = #tpu.pipeline_mode<synchronous>, transform_indices = @transform_1, window_bounds = array<i64: 8, 128>}]} {
    %c0 = arith.constant 0 : index
    %c0_0 = arith.constant 0 : index
    %0 = vector.load %arg1[%c0, %c0_0] : memref<8x128xf32, #tpu.memory_space<vmem>>, vector<8x128xf32>
    %c0_1 = arith.constant 0 : index
    %c0_2 = arith.constant 0 : index
    %1 = vector.load %arg2[%c0_1, %c0_2] : memref<8x128xf32, #tpu.memory_space<vmem>>, vector<8x128xf32>
    tpu.vector_store %arg2[%c0_1, %c0_2], %0 {strides = array<i32>} : memref<8x128xf32, #tpu.memory_space<vmem>>, vector<8x128xf32>,
    return
  }
  func.func @transform_0(%arg0: i32) -> (i32, i32) {
    %c0_i32 = arith.constant 0 : i32
    %c0_i32_0 = arith.constant 0 : i32
    %c0_i32_1 = arith.constant 0 : i32
    return %c0_i32, %c0_i32_0 : i32, i32
  }
  func.func @transform_1(%arg0: i32) -> (i32, i32) {
    %c0_i32 = arith.constant 0 : i32
    %c0_i32_0 = arith.constant 0 : i32
    %c0_i32_1 = arith.constant 0 : i32
    return %c0_i32, %c0_i32_0 : i32, i32
  }
}

module attributes {stable_mosaic.version = 11 : i64} {
  func.func @_ffn_kernel_resident(%arg0: i32, %arg1: memref<16x32xbf16, #tpu.memory_space<vmem>>, %arg2: memref<32x128xbf16, #tpu.memory_space<vmem>>, %arg3: memref<1x128xf32, #tpu.memory_space<vmem>>, %arg4: memref<128x32xbf16, #tpu.memory_space<vmem>>, %arg5: memref<1x32xf32, #tpu.memory_space<vmem>>, %arg6: memref<16x32xf32, #tpu.memory_space<vmem>>) attributes {dimension_semantics = [#tpu.dimension_semantics<parallel>], iteration_bounds = array<i64: 1>, scalar_prefetch = 0 : i64, scratch_operands = 0 : i64, tpu.core_type = #tpu.core_type<tc>, window_params = [{transform_indices = @transform_0, window_bounds = array<i64: 16, 32>}, {pipeline_mode = #tpu.pipeline_mode<synchronous>, transform_indices = @transform_1, window_bounds = array<i64: 32, 128>}, {pipeline_mode = #tpu.pipeline_mode<synchronous>, transform_indices = @transform_2, window_bounds = array<i64: 1, 128>}, {pipeline_mode = #tpu.pipeline_mode<synchronous>, transform_indices = @transform_3, window_bounds = array<i64: 128, 32>}, {pipeline_mode = #tpu.pipeline_mode<synchronous>, transform_indices = @transform_4, window_bounds = array<i64: 1, 32>}, {transform_indices = @transform_5, window_bounds = array<i64: 16, 32>}]} {
    %c0 = arith.constant 0 : index
    %c0_0 = arith.constant 0 : index
    %0 = vector.load %arg1[%c0, %c0_0] : memref<16x32xbf16, #tpu.memory_space<vmem>>, vector<16x32xbf16>
    %c0_1 = arith.constant 0 : index
    %c0_2 = arith.constant 0 : index
    %1 = vector.load %arg2[%c0_1, %c0_2] : memref<32x128xbf16, #tpu.memory_space<vmem>>, vector<32x128xbf16>
    %cst = arith.constant dense<0.000000e+00> : vector<16x128xf32>
    %2 = tpu.matmul %0, %1, %cst {dimension_numbers = #tpu.dot_dimension_numbers<[1], [0], [0], [1], [0, 0, 1, 1], [], []>} : vector<16x32xbf16>, vector<32x128xbf16>, vector<16x128xf32> -> vector<16x128xf32>
    %c0_3 = arith.constant 0 : index
    %c0_4 = arith.constant 0 : index
    %3 = vector.load %arg3[%c0_3, %c0_4] : memref<1x128xf32, #tpu.memory_space<vmem>>, vector<1x128xf32>
    %4 = vector.broadcast %3 : vector<1x128xf32> to vector<16x128xf32>
    %5 = arith.addf %2, %4 : vector<16x128xf32>
    %cst_5 = arith.constant 5.000000e-01 : f32
    %6 = vector.broadcast %cst_5 : f32 to vector<16x128xf32>
    %7 = arith.mulf %6, %5 : vector<16x128xf32>
    %cst_6 = arith.constant 0.707106769 : f32
    %8 = vector.broadcast %cst_6 : f32 to vector<16x128xf32>
    %9 = arith.mulf %5, %8 : vector<16x128xf32>
    %10 = math.erf %9 : vector<16x128xf32>
    %cst_7 = arith.constant 1.000000e+00 : f32
    %11 = vector.broadcast %cst_7 : f32 to vector<16x128xf32>
    %12 = arith.addf %11, %10 : vector<16x128xf32>
    %13 = arith.mulf %7, %12 : vector<16x128xf32>
    %14 = arith.truncf %13 : vector<16x128xf32> to vector<16x128xbf16>
    %c0_8 = arith.constant 0 : index
    %c0_9 = arith.constant 0 : index
    %15 = vector.load %arg4[%c0_8, %c0_9] : memref<128x32xbf16, #tpu.memory_space<vmem>>, vector<128x32xbf16>
    %cst_10 = arith.constant dense<0.000000e+00> : vector<16x32xf32>
    %16 = tpu.matmul %14, %15, %cst_10 {dimension_numbers = #tpu.dot_dimension_numbers<[1], [0], [0], [1], [0, 0, 1, 1], [], []>} : vector<16x128xbf16>, vector<128x32xbf16>, vector<16x32xf32> -> vector<16x32xf32>
    %c0_11 = arith.constant 0 : index
    %c0_12 = arith.constant 0 : index
    %17 = vector.load %arg5[%c0_11, %c0_12] : memref<1x32xf32, #tpu.memory_space<vmem>>, vector<1x32xf32>
    %18 = vector.broadcast %17 : vector<1x32xf32> to vector<16x32xf32>
    %19 = arith.addf %16, %18 : vector<16x32xf32>
    %c0_13 = arith.constant 0 : index
    %c0_14 = arith.constant 0 : index
    %20 = vector.load %arg6[%c0_13, %c0_14] : memref<16x32xf32, #tpu.memory_space<vmem>>, vector<16x32xf32>
    tpu.vector_store %arg6[%c0_13, %c0_14], %19 {strides = array<i32>} : memref<16x32xf32, #tpu.memory_space<vmem>>, vector<16x32xf32>,
    return
  }
  func.func @transform_0(%arg0: i32) -> (i32, i32) {
    %c0_i32 = arith.constant 0 : i32
    %c0_i32_0 = arith.constant 0 : i32
    return %arg0, %c0_i32 : i32, i32
  }
  func.func @transform_1(%arg0: i32) -> (i32, i32) {
    %c0_i32 = arith.constant 0 : i32
    %c0_i32_0 = arith.constant 0 : i32
    %c0_i32_1 = arith.constant 0 : i32
    return %c0_i32, %c0_i32_0 : i32, i32
  }
  func.func @transform_2(%arg0: i32) -> (i32, i32) {
    %c0_i32 = arith.constant 0 : i32
    %c0_i32_0 = arith.constant 0 : i32
    %c0_i32_1 = arith.constant 0 : i32
    return %c0_i32, %c0_i32_0 : i32, i32
  }
  func.func @transform_3(%arg0: i32) -> (i32, i32) {
    %c0_i32 = arith.constant 0 : i32
    %c0_i32_0 = arith.constant 0 : i32
    %c0_i32_1 = arith.constant 0 : i32
    return %c0_i32, %c0_i32_0 : i32, i32
  }
  func.func @transform_4(%arg0: i32) -> (i32, i32) {
    %c0_i32 = arith.constant 0 : i32
    %c0_i32_0 = arith.constant 0 : i32
    %c0_i32_1 = arith.constant 0 : i32
    return %c0_i32, %c0_i32_0 : i32, i32
  }
  func.func @transform_5(%arg0: i32) -> (i32, i32) {
    %c0_i32 = arith.constant 0 : i32
    %c0_i32_0 = arith.constant 0 : i32
    return %arg0, %c0_i32 : i32, i32
  }
}

</mosaic_0001>

<bundles_post_ra>
// kernel: tpu_custom_call.1
= control target key start
LH: loop header
LB: loop body
LE: loop exit
PB: predicated region body
PF: predicated region fallthrough
CT: control target
= control target key end

     0   :  { %6 = vsyncpa [#allocation3], 0  ;;  %s340_s0 = inlined_call_operand.hbm [shape: f32[8,128], index: 0, kind: input, shape index: {}]   ;;  %s341_s1 = inlined_call_operand.hbm [shape: f32[8,128], index: 1, kind: output, shape index: {}]  }
   0x1   :  { %7 = vsyncpa [#allocation4], 0  ;;  %s261_s6 = smov 0  }
   0x2 LB: > { %s144_s7 = sadd.s32 4294967295, %s247_s6   ;;  %p145_p0 = scmp.ge.s32.totalorder %s247_s6, 1  ;;  %s247_s6 = sphi %s261_s6, %s13_s6  }
   0x3   : > { %p60_p1 = scmp.lt.s32.totalorder %s247_s6, 3  ;;  %p275_p3 = scmp.eq.s32.totalorder %s144_s7, 0 }
   0x4   : > { %s249_s10 = smov [#allocation2]   ;;  %s179_s15 = scalar_lea.hbm %s340_s0, 128 }
   0x5   : > { %p269_p2 = pnand %p145_p0, %p60_p1  ;;  %s73_s11 = sshll.u32 %s249_s10, 4  ;;  %s74_s11 = int_to_ptr.vmem [resolvable:$true] %s73_s11 }
   0x6   : > { %s346_s9 = scalar_select %p275_p3, 1, 0 }
   0x7   : > { %s345_s8 = scalar_select %p269_p2, 1, 0 }
   0x8   : > { %p161_p4 = pneg %p269_p2  ;;  %p180_p6 = scmp.ne.s32.totalorder %s340_s0, %s179_s15 }
   0x9   : > { %p186_p10 = scmp.lt.u32.totalorder %s179_s15, %s340_s0 }
   0xa   : > { %p283_p5 = pnand %p275_p3, %p161_p4 }
   0xc   : > { %p181_p7 = pneg %p283_p5 }
   0xe   : > { %p182_p8 = pnand %p181_p7, %p180_p6 }
  0x10   : > { %p183_p9 = pneg %p182_p8 }
  0x12   : > { %p188_p11 = pnand %p186_p10, %p183_p9 }
  0x14   : > { %191 = shalt.err (!%p188_p11)
}
  0x15   : > { %s192_s20 = scalar_lea.vmem %s74_s11, 128  ;;  %p200_p1 = scmp.lt.s32.totalorder %s74_s11, %s74_s11 }
  0x16   : > { %p193_p12 = scmp.ne.s32.totalorder %s74_s11, %s192_s20  ;;  %p201_p4 = scmp.lt.s32.totalorder %s192_s20, %s192_s20 }
  0x18   : > { %p195_p13 = pnand %p193_p12, %p181_p7  ;;  %p202_p3 = por %p201_p4, %p200_p1 }
  0x1a   : > { %p196_p0 = pneg %p195_p13 }
  0x1c   : > { %p203_p2 = pnand %p202_p3, %p196_p0 }
  0x1e   : > { %206 = shalt.err (!%p203_p2)
}
  0x1f   : > { %164 = dma.hbm_to_vmem [thread:$0]  (!%p283_p5), %s340_s0, 128, %s74_s11, [#allocation3]  }
  0x20   : > { %p348_p6 = scmp.ne.s32.totalorder %s345_s8, 0 }
  0x21   : > { %p349_p8 = scmp.ne.s32.totalorder (!%p348_p6), %s346_s9, 0 }
  0x22   : > { %86 = sbr.rel (%p348_p6) target bundleno = 67 (0x43), region = 24 }
  0x29   : > { %238 = dma.done.wait (%p349_p8), [#allocation3], 128  }
  0x2a   : > { %240 = vsyncadd (%p349_p8), [#allocation3], 4294967168  ;;  %s250_s23 = smov [#allocation5]   ;;  %p311_p2 = scmp.eq.s32.totalorder %s144_s7, 1  ;;  %v96_v0 = vld [vmem:[#allocation2] sm:$0xff] }
  0x2b   : > { %s105_s24 = sshll.u32 %s250_s23, 4  ;;  %97 = vst [vmem:[#allocation5] sm:$0xff] %v96_v0  ;;  %s106_s24 = int_to_ptr.vmem [resolvable:$true] %s105_s24 }
  0x2c   : > { %s207_s26 = scalar_lea.vmem %s106_s24, 128  ;;  %p214_p9 = scmp.lt.s32.totalorder %s106_s24, %s106_s24 }
  0x2d   : > { %p208_p3 = scmp.ne.s32.totalorder %s106_s24, %s207_s26  ;;  %p215_p10 = scmp.lt.s32.totalorder %s207_s26, %s207_s26 }
  0x2f   : > { %p209_p5 = pnand %p208_p3, %p311_p2  ;;  %p216_p11 = por %p215_p10, %p214_p9 }
  0x31   : > { %p210_p7 = pneg %p209_p5 }
  0x33   : > { %p217_p12 = pnand %p216_p11, %p210_p7 }
  0x35   : > { %220 = shalt.err (!%p217_p12)
}
  0x36   : > { %s221_s29 = scalar_lea.hbm %s341_s1, 128 }
  0x37   : > { %p222_p13 = scmp.ne.s32.totalorder %s341_s1, %s221_s29  ;;  %p227_p4 = scmp.lt.u32.totalorder %s221_s29, %s341_s1 }
  0x39   : > { %p223_p0 = pnand %p222_p13, %p311_p2 }
  0x3b   : > { %p224_p1 = pneg %p223_p0 }
  0x3d   : > { %p229_p6 = pnand %p227_p4, %p224_p1 }
  0x3f   : > { %232 = shalt.err (!%p229_p6)
}
  0x40   : > { %158 = dma.vmem_to_hbm [thread:$0]  (%p311_p2), %s106_s24, 128, %s341_s1, [#allocation4]  }
  0x41   : > { %242 = dma.done.wait (%p311_p2), [#allocation4], 128  }
  0x42   : > { %244 = vsyncadd (%p311_p2), [#allocation4], 4294967168 }
  0x43 PF: > { %s13_s6 = sadd.s32 1, %s247_s6  }
  0x44   : > { %p10_p8 = scmp.ge.s32.totalorder %s13_s6, 4  }
  0x46   :  { %12 = sbr.rel (!%p10_p8) target bundleno = 2 (0x2), region = 53 }
  0x4d   :  { %118 = vsyncpa [#allocation3], 1 }
  0x4e   :  { %120 = vsyncpa [#allocation3 + $0x1], 1 }
  0x4f   :  { %121 = vsyncpa [#allocation4], 1 }
  0x50   :  { %123 = vsyncpa [#allocation4 + $0x1], 1 }

// kernel: tpu_custom_call.1
= control target key start
LH: loop header
LB: loop body
LE: loop exit
PB: predicated region body
PF: predicated region fallthrough
CT: control target
= control target key end

     0   :  { %v336_v1 = vmov 0.0   ;;  %vm337_vm0 = vmmov 0   ;;  %vm52_vm1 = vcmask 261120   ;;  %s425_s0 = inlined_call_operand.vmem [shape: bf16[16,32], index: 0, kind: input, shape index: {}]   ;;  %s426_s1 = inlined_call_operand.vmem [shape: bf16[32,128], index: 1, kind: input, shape index: {}]   ;;  %s427_s2 = inlined_call_operand.vmem [shape: f32[1,128], index: 2, kind: input, shape index: {}]   ;;  %s428_s3 = inlined_call_operand.vmem [shape: bf16[128,32], index: 3, kind: input, shape index: {}]   ;;  %s429_s4 = inlined_call_operand.vmem [shape: f32[1,32], index: 4, kind: input, shape index: {}]   ;;  %s430_s5 = inlined_call_operand.hbm [shape: f32[16,32], index: 5, kind: output, shape index: {}]  }
   0x1   :  { %v297_v0 = vld [vmem:[%s426_s1] sm:$0xff]   ;;  %264 = vmatprep.subr.bf16.mxu0 %v336_v1  ;;  %272 = vmatprep.subr.bf16.mxu1 %v336_v1  ;;  %v298_v2 = vld [vmem:[%s426_s1 + $0x8] sm:$0xff]  }
   0x2   :  { %265 = vmatpush3.bf16.msra.mxu0 %v297_v0  ;;  %268 = vmatprep.mubr.msk.bf16.mxu0 %vm337_vm0, %v336_v1  ;;  %v300_v3 = vld [vmem:[%s428_s3] sm:$0xff]   ;;  %v301_v5 = vld [vmem:[%s428_s3 + $0x8] sm:$0xff]  }
   0x3   :  { %266 = vmatprep.subr.bf16.mxu0 %v336_v1  ;;  %288 = vmatprep.mubr.msk.bf16.mxu1 %vm337_vm0, %v336_v1  ;;  %v299_v4 = vld [vmem:[%s425_s0] sm:$0xff]  }
   0x4   :  { %273 = vmatpush3.bf16.msra.mxu1 %v300_v3 }
   0x5   :  { %274 = vmatprep.subr.bf16.mxu1 %v336_v1 }
   0x6   :  { %267 = vmatpush3.bf16.msra.mxu0 %v298_v2 }
   0x8   :  { %275 = vmatpush3.bf16.msra.mxu1 %v301_v5 }
   0x9   :  { %269 = vmatmul.mubr.msk.bf16.vlgmr.msra.gmra.mrb[0].mxu0 %vm52_vm1, %v299_v4 }
   0xa   :  { %10 = vsyncpa [#allocation3], 0  ;;  %276 = vmatprep.subr.bf16.mxu1 %v336_v1  ;;  %v302_v6 = vld [vmem:[%s428_s3 + $0x10] sm:$0xff]   ;;  %v303_v7 = vld [vmem:[%s428_s3 + $0x18] sm:$0xff]   ;;  %s338_s15 = smov [#allocation2]  }
   0xb   :  { %v304_v8 = vld [vmem:[%s428_s3 + $0x20] sm:$0xff]   ;;  %v305_v9 = vld [vmem:[%s428_s3 + $0x28] sm:$0xff]   ;;  %v306_v10 = vld [vmem:[%s428_s3 + $0x30] sm:$0xff]   ;;  %s227_s16 = sshll.u32 %s338_s15, 4  ;;  %s228_s16 = int_to_ptr.vmem [resolvable:$true] %s227_s16 }
   0xc   :  { %277 = vmatpush3.bf16.msra.mxu1 %v302_v6  ;;  %v307_v11 = vld [vmem:[%s428_s3 + $0x38] sm:$0xff]   ;;  %v238_v12 = vld [vmem:[%s427_s2] ss:$0 sm:$0xff]  ;;  %s312_s17 = scalar_lea.vmem %s228_s16, 256  ;;  %p317_p1 = scmp.lt.s32.totalorder %s228_s16, %s228_s16 }
   0xd   :  { %278 = vmatprep.subr.bf16.mxu1 %v336_v1  ;;  %v243_v30 = vld [vmem:[%s429_s4] ss:$0 sm:$0xff]  ;;  %p313_p0 = scmp.ne.s32.totalorder %s228_s16, %s312_s17  ;;  %p318_p2 = scmp.lt.s32.totalorder %s312_s17, %s312_s17 }
   0xf   :  { %p319_p3 = por %p318_p2, %p317_p1 }
  0x10   :  { %279 = vmatpush3.bf16.msra.mxu1 %v303_v7 }
  0x11   :  { %280 = vmatprep.subr.bf16.mxu1 %v336_v1  ;;  %p320_p4 = pnand %p319_p3, %p313_p0 }
  0x14   :  { %281 = vmatpush3.bf16.msra.mxu1 %v304_v8 }
  0x15   :  { %282 = vmatprep.subr.bf16.mxu1 %v336_v1 }
  0x18   :  { %283 = vmatpush3.bf16.msra.mxu1 %v305_v9 }
  0x19   :  { %284 = vmatprep.subr.bf16.mxu1 %v336_v1 }
  0x1c   :  { %285 = vmatpush3.bf16.msra.mxu1 %v306_v10 }
  0x1d   :  { %286 = vmatprep.subr.bf16.mxu1 %v336_v1 }
  0x20   :  { %287 = vmatpush3.bf16.msra.mxu1 %v307_v11 }
  0xdc   :  { %v90_v13 = vpop.f32.mrb[0].mxu0 }
  0xdd   :  { %v91_v14 = vadd.f32 %v238_v12, %v90_v13  ;;  %v270_v15 = vpop.f32.mrb[1].mxu0 }
  0xde   :  { %v93_v16 = vpop.f32.mrb[2].mxu0 }
  0xdf   :  { %v99_v17 = vmul.f32 0.70710677, %v91_v14  ;;  %v94_v18 = vadd.f32 %v238_v12, %v93_v16  ;;  %v271_v19 = vpop.f32.mrb[3].mxu0  ;;  %v97_v24 = vmul.f32 0.5, %v91_v14 }
  0xe1   :  { %308 = verf.f32 %v99_v17  ;;  %v100_v20 = vmul.f32 0.70710677, %v94_v18  ;;  %v98_v25 = vmul.f32 0.5, %v94_v18 }
  0xe3   :  { %310 = verf.f32 %v100_v20 }
  0xeb   :  { %v309_v21 = vpop.eup %308 }
  0xec   :  { %v103_v22 = vadd.f32 1.0, %v309_v21 }
  0xed   :  { %v311_v23 = vpop.eup %310 }
  0xee   :  { %v104_v26 = vadd.f32 1.0, %v311_v23  ;;  %v105_v27 = vmul.f32 %v103_v22, %v97_v24 }
  0xf0   :  { %v106_v28 = vmul.f32 %v104_v26, %v98_v25 }
  0xf2   :  { %v107_v29 = vpack.c.bf16 %v106_v28, %v105_v27 }
  0xf4   :  { %289 = vmatmul.mubr.bf16.vlgmr.msra.gmra.mrb[0].mxu1 %v107_v29 }
 0x1c7   :  { %v213_v31 = vpop.f32.mrb[0].mxu1 }
 0x1c8   :  { %v214_v32 = vadd.f32 %v243_v30, %v213_v31  ;;  %v290_v33 = vpop.f32.mrb[1].mxu1 }
 0x1c9   :  { %v216_v34 = vpop.f32.mrb[2].mxu1 }
 0x1ca   :  { %220 = vst.msk [vmem:[#allocation2] sm:$0xff] %vm52_vm1, %v214_v32  ;;  %v217_v35 = vadd.f32 %v243_v30, %v216_v34  ;;  %v291_v36 = vpop.f32.mrb[3].mxu1 }
 0x1cc   :  { %221 = vst.msk [vmem:[#allocation2 + $0x8] sm:$0xff] %vm52_vm1, %v217_v35 }
 0x1cd   :  { %323 = shalt.err (!%p320_p4)
}
 0x1ce   :  { %s324_s19 = scalar_lea.hbm %s430_s5, 256 }
 0x1cf   :  { %p325_p5 = scmp.ne.s32.totalorder %s430_s5, %s324_s19  ;;  %p328_p6 = scmp.lt.u32.totalorder %s324_s19, %s430_s5 }
 0x1d1   :  { %p330_p7 = pnand %p328_p6, %p325_p5 }
 0x1d3   :  { %333 = shalt.err (!%p330_p7)
}
 0x1d4   :  { %s339_s24 = smov 128   ;;  %s340_s25 = smov 8  }
 0x1d5   :  { %233 = dma.vmem_to_hbm [thread:$0]  %s228_s16, 256, %s430_s5, [#allocation3], %s339_s24, %s339_s24, %s340_s25  }
 0x1d6   :  { %334 = dma.done.wait [#allocation3], 256  }
 0x1d7   :  { %335 = vsyncadd [#allocation3], 4294967040 }
 0x1d8   :  { %237 = vsyncpa [#allocation3], 1 }

</bundles_post_ra>
